<compile_context>
chip_gen: v6e
topology: v6e:2x2x1
jax: 0.10.0
libtpu: 0.0.40
codegen_flags: <defaults>
</compile_context>

<pallas_src>
import functools

import jax
import jax.numpy as jnp
from jax.experimental import pallas as pl
from jax.experimental.pallas import tpu as pltpu


# ---------------------------------------------------------------------------
# Kernel 1: per-channel image normalization  (QDTrack.normalizer)
# ---------------------------------------------------------------------------
def _normalize_kernel(x_ref, scale_ref, bias_ref, o_ref):
    # x_ref:      (BLOCK_ROWS, TILE_COLS) lane-dense tile (f32)
    # scale_ref:  (BLOCK_ROWS, 1) per-row 1/std
    # bias_ref:   (BLOCK_ROWS, 1) per-row -mean/std
    # One broadcast vmul + one vadd per vreg; no per-element divide.
    o_ref[...] = (x_ref[...] * scale_ref[...] + bias_ref[...]).astype(o_ref.dtype)


def preprocess_image(images, pixel_mean, pixel_std,
                     block_rows=8, max_tile_cols=32768):
    """(x - pixel_mean[c]) / pixel_std[c] for NCHW images.

    The wrapper flattens each (frame, channel) plane into one row of a 2-D slab
    (rows = N*C, cols = H*W).  Columns are tiled in multiples of 128 lanes so
    stores are unmasked full-lane vst's.  Rows are either covered by a single
    full-extent block (N*C <= block_rows, no HBM pad copy of the image) or
    tiled in multiples of 8 sublanes.  Default column tile is 32768 f32 = 128 KB
    per row-block (8 x 32768 f32 = 1 MiB block, ~4 MiB with in/out double
    buffering: safe on v5e/v6e 128 MiB VMEM and v7x 64 MiB VMEM).
    """
    n, c, h, w = images.shape
    nc, hw = n * c, h * w

    # Per-channel affine params precomputed once (hoists the reciprocal to C work).
    scale = (1.0 / pixel_std).astype(jnp.float32)             # (C,)
    bias = (-pixel_mean / pixel_std).astype(jnp.float32)      # (C,)
    # Row r of the flattened slab is frame r // C, channel r % C.
    row_scale = jnp.tile(scale, n)[:, None]                   # (N*C, 1)
    row_bias = jnp.tile(bias, n)[:, None]                     # (N*C, 1)

    # Lane-dense tiling: lane dim a multiple of 128.
    lanes = 128
    tile_cols = min(pl.cdiv(hw, lanes) * lanes, max_tile_cols)
    hw_pad = pl.cdiv(hw, tile_cols) * tile_cols

    # Row tiling: a block sublane dim must be a multiple of 8 OR equal the full
    # row extent.  Using the full extent when nc <= block_rows avoids padding
    # (and thus an extra HBM read+write of the whole slab) in the common case.
    if nc <= block_rows:
        br = nc
        nc_pad = nc
    else:
        br = block_rows
        nc_pad = pl.cdiv(nc, br) * br

    x = images.reshape(nc, hw)
    needs_pad = (nc_pad, hw_pad) != (nc, hw)
    if needs_pad:
        x = jnp.pad(x, ((0, nc_pad - nc), (0, hw_pad - hw)))
    if nc_pad != nc:
        row_scale = jnp.pad(row_scale, ((0, nc_pad - nc), (0, 0)))
        row_bias = jnp.pad(row_bias, ((0, nc_pad - nc), (0, 0)))

    grid = (nc_pad // br, hw_pad // tile_cols)
    out = pl.pallas_call(
        _normalize_kernel,
        out_shape=jax.ShapeDtypeStruct((nc_pad, hw_pad), images.dtype),
        grid=grid,
        in_specs=[
            pl.BlockSpec((br, tile_cols), lambda i, j: (i, j)),
            pl.BlockSpec((br, 1), lambda i, j: (i, 0)),
            pl.BlockSpec((br, 1), lambda i, j: (i, 0)),
        ],
        out_specs=pl.BlockSpec((br, tile_cols), lambda i, j: (i, j)),
        compiler_params=pltpu.CompilerParams(
            dimension_semantics=("parallel", "parallel"),
            vmem_limit_bytes=32 * 1024 * 1024,
        ),
    )(x, row_scale, row_bias)

    if needs_pad:
        out = out[:nc, :hw]
    return out.reshape(n, c, h, w)


# ---------------------------------------------------------------------------
# Kernel 2: tracking_postprocess score fusion (log-space)
#   clip_cls_scores = softmax(clip_cls_logits, axis=1)
#   score = (clip_cls_scores**k1 * tracklet_score**k2 * len_score**k3)**(1/k_all)
# ---------------------------------------------------------------------------
def _score_fusion_kernel(logits_ref, tscore_ref, lscore_ref,
                         probs_ref, score_ref, *, k1_scaled, k2, k3, inv_k_all):
    logits = logits_ref[...]                                    # (TILE_T, K_pad) f32
    m = jnp.max(logits, axis=-1, keepdims=True)
    z = logits - m
    e = jnp.exp(z)
    s = jnp.sum(e, axis=-1, keepdims=True)                      # (TILE_T, 1)

    # Reciprocal hoisted to the (TILE_T, 1) row vector: one broadcast vmul per
    # element instead of a per-element divide.  approx=False keeps exact
    # softmax probabilities.
    inv_s = pl.reciprocal(s, approx=False)
    probs = e * inv_s                                           # softmax, axis=1

    logp = z - jnp.log(s)                                       # log-softmax
    ts = tscore_ref[...]                                        # (TILE_T, 1)
    ls = lscore_ref[...]                                        # (TILE_T, 1)
    eps = jnp.float32(1e-30)
    # Per-row (T-sized) transcendental work; 1/k_all folded in here so the
    # per-element path is a single fused scale + add before the exp.
    row_term = (k2 * jnp.log(jnp.maximum(ts, eps))
                + k3 * jnp.log(jnp.maximum(ls, eps))) * inv_k_all

    # (p**k1 * ts**k2 * ls**k3)**(1/k_all) == exp(logp*(k1/k_all) + row_term):
    # one exp per (T, K) element.
    score = jnp.exp(logp * k1_scaled + row_term)
    # Preserve exact-zero semantics of the pow formulation (any 0 factor -> 0).
    score = jnp.where((probs <= 0.0) | (ts <= 0.0) | (ls <= 0.0),
                      jnp.float32(0.0), score)

    probs_ref[...] = probs
    score_ref[...] = score


def tracking_score_fusion(clip_cls_logits, tracklet_scores, len_scores, k_values,
                          tile_t=64):
    """clip_cls_logits: (T, K); tracklet_scores / len_scores: (T,) or (T, 1)."""
    t, k = clip_cls_logits.shape
    k1, k2, k3 = (float(v) for v in k_values)
    inv_k_all = 1.0 / (k1 + k2 + k3)

    # Lane-dense class dim (multiple of 128) and T tiled in multiples of 8.
    tile_t = min(tile_t, pl.cdiv(t, 8) * 8)
    t_pad = pl.cdiv(t, tile_t) * tile_t
    k_pad = pl.cdiv(k, 128) * 128

    logits = clip_cls_logits.astype(jnp.float32)
    ts = tracklet_scores.astype(jnp.float32).reshape(t, 1)
    ls = len_scores.astype(jnp.float32).reshape(t, 1)
    if (t_pad, k_pad) != (t, k):
        # Padded classes get a huge negative logit -> zero prob / zero score,
        # so they cannot perturb the row max / row sum of real classes.
        logits = jnp.pad(logits, ((0, t_pad - t), (0, k_pad - k)),
                         constant_values=-1e30)
        ts = jnp.pad(ts, ((0, t_pad - t), (0, 0)))
        ls = jnp.pad(ls, ((0, t_pad - t), (0, 0)))

    kernel = functools.partial(_score_fusion_kernel,
                               k1_scaled=k1 * inv_k_all, k2=k2, k3=k3,
                               inv_k_all=inv_k_all)
    probs, score = pl.pallas_call(
        kernel,
        out_shape=(jax.ShapeDtypeStruct((t_pad, k_pad), jnp.float32),
                   jax.ShapeDtypeStruct((t_pad, k_pad), jnp.float32)),
        grid=(t_pad // tile_t,),
        in_specs=[
            pl.BlockSpec((tile_t, k_pad), lambda i: (i, 0)),
            pl.BlockSpec((tile_t, 1), lambda i: (i, 0)),
            pl.BlockSpec((tile_t, 1), lambda i: (i, 0)),
        ],
        out_specs=(pl.BlockSpec((tile_t, k_pad), lambda i: (i, 0)),
                   pl.BlockSpec((tile_t, k_pad), lambda i: (i, 0))),
        compiler_params=pltpu.CompilerParams(
            dimension_semantics=("parallel",),
            vmem_limit_bytes=32 * 1024 * 1024,
        ),
    )(logits, ts, ls)

    return probs[:t, :k], score[:t, :k]


# ---------------------------------------------------------------------------
# Driver
# ---------------------------------------------------------------------------
if __name__ == "__main__":
    key = jax.random.PRNGKey(0)
    k_img, k_logit, k_score = jax.random.split(key, 3)

    # --- preprocess_image path ---------------------------------------------
    N, C, H, W = 2, 3, 16, 16                       # 2 frames, RGB, 16x16
    images = jax.random.uniform(k_img, (N, C, H, W), jnp.float32) * 255.0
    pixel_mean = jnp.array([103.530, 116.280, 123.675], jnp.float32)  # (C,)
    pixel_std = jnp.array([57.375, 57.120, 58.395], jnp.float32)      # (C,)

    normed = preprocess_image(images, pixel_mean, pixel_std)
    jax.block_until_ready(normed)

    ref_norm = (images - pixel_mean.reshape(1, C, 1, 1)) / pixel_std.reshape(1, C, 1, 1)
    assert jnp.allclose(normed, ref_norm, atol=1e-5), "normalization mismatch"

    # --- tracking_postprocess score fusion path -----------------------------
    T, K = 4, 8                                     # 4 tracklets, 8 classes
    M = 8                                           # seq_length_range[1]
    k_values = (2.0, 3.5, 3.5)                      # cfg.MODEL.QDTRACK.K_VALUES

    clip_cls_logits = jax.random.normal(k_logit, (T, K), jnp.float32)
    per_tracklet_scores = jax.random.uniform(k_score, (T,), jnp.float32)   # mean det score
    tracklet_lengths = jnp.array([3.0, 5.0, 2.0, 8.0], jnp.float32)
    max_len = float(max(int(tracklet_lengths.max()), M))
    len_scores = tracklet_lengths / max_len

    probs, fused = tracking_score_fusion(
        clip_cls_logits, per_tracklet_scores, len_scores, k_values)
    jax.block_until_ready((probs, fused))

    k1, k2, k3 = k_values
    ref_probs = jax.nn.softmax(clip_cls_logits, axis=1)
    ref_fused = (ref_probs ** k1
                 * per_tracklet_scores[:, None] ** k2
                 * len_scores[:, None] ** k3) ** (1.0 / (k1 + k2 + k3))
    assert jnp.allclose(probs, ref_probs, atol=1e-5), "softmax mismatch"
    assert jnp.allclose(fused, ref_fused, atol=1e-4), "fused score mismatch"

    print("KERNEL_OK")
</pallas_src>

<mosaic_0001>
module attributes {stable_mosaic.version = 11 : i64} {
  func.func @_normalize_kernel(%arg0: i32, %arg1: i32, %arg2: memref<6x256xf32, #tpu.memory_space<vmem>>, %arg3: memref<6x1xf32, #tpu.memory_space<vmem>>, %arg4: memref<6x1xf32, #tpu.memory_space<vmem>>, %arg5: memref<6x256xf32, #tpu.memory_space<vmem>>) attributes {dimension_semantics = [#tpu.dimension_semantics<parallel>, #tpu.dimension_semantics<parallel>], iteration_bounds = array<i64: 1, 1>, scalar_prefetch = 0 : i64, scratch_operands = 0 : i64, tpu.core_type = #tpu.core_type<tc>, window_params = [{transform_indices = @transform_0, window_bounds = array<i64: 6, 256>}, {transform_indices = @transform_1, window_bounds = array<i64: 6, 1>}, {transform_indices = @transform_2, window_bounds = array<i64: 6, 1>}, {transform_indices = @transform_3, window_bounds = array<i64: 6, 256>}]} {
    %c0 = arith.constant 0 : index
    %c0_0 = arith.constant 0 : index
    %0 = vector.load %arg2[%c0, %c0_0] : memref<6x256xf32, #tpu.memory_space<vmem>>, vector<6x256xf32>
    %c0_1 = arith.constant 0 : index
    %c0_2 = arith.constant 0 : index
    %1 = vector.load %arg3[%c0_1, %c0_2] : memref<6x1xf32, #tpu.memory_space<vmem>>, vector<6x1xf32>
    %2 = vector.broadcast %1 : vector<6x1xf32> to vector<6x256xf32>
    %3 = arith.mulf %0, %2 : vector<6x256xf32>
    %c0_3 = arith.constant 0 : index
    %c0_4 = arith.constant 0 : index
    %4 = vector.load %arg4[%c0_3, %c0_4] : memref<6x1xf32, #tpu.memory_space<vmem>>, vector<6x1xf32>
    %5 = vector.broadcast %4 : vector<6x1xf32> to vector<6x256xf32>
    %6 = arith.addf %3, %5 : vector<6x256xf32>
    %c0_5 = arith.constant 0 : index
    %c0_6 = arith.constant 0 : index
    %7 = vector.load %arg5[%c0_5, %c0_6] : memref<6x256xf32, #tpu.memory_space<vmem>>, vector<6x256xf32>
    tpu.vector_store %arg5[%c0_5, %c0_6], %6 {strides = array<i32>} : memref<6x256xf32, #tpu.memory_space<vmem>>, vector<6x256xf32>,
    return
  }
  func.func @transform_0(%arg0: i32, %arg1: i32) -> (i32, i32) {
    %c0_i32 = arith.constant 0 : i32
    return %arg0, %arg1 : i32, i32
  }
  func.func @transform_1(%arg0: i32, %arg1: i32) -> (i32, i32) {
    %c0_i32 = arith.constant 0 : i32
    %c0_i32_0 = arith.constant 0 : i32
    return %arg0, %c0_i32 : i32, i32
  }
  func.func @transform_2(%arg0: i32, %arg1: i32) -> (i32, i32) {
    %c0_i32 = arith.constant 0 : i32
    %c0_i32_0 = arith.constant 0 : i32
    return %arg0, %c0_i32 : i32, i32
  }
  func.func @transform_3(%arg0: i32, %arg1: i32) -> (i32, i32) {
    %c0_i32 = arith.constant 0 : i32
    return %arg0, %arg1 : i32, i32
  }
}

</mosaic_0001>

<bundles_post_ra>
// kernel: tpu_custom_call.1
= control target key start
LH: loop header
LB: loop body
LE: loop exit
PB: predicated region body
PF: predicated region fallthrough
CT: control target
= control target key end

     0   :  { %v74_v1 = vmov 0   ;;  %s111_s0 = inlined_call_operand.vmem [shape: f32[6,256], index: 0, kind: input, shape index: {}]   ;;  %s112_s1 = inlined_call_operand.vmem [shape: f32[6,1], index: 1, kind: input, shape index: {}]   ;;  %s113_s2 = inlined_call_operand.vmem [shape: f32[6,1], index: 2, kind: input, shape index: {}]   ;;  %s114_s3 = inlined_call_operand.hbm [shape: f32[6,256], index: 3, kind: output, shape index: {}]  }
   0x1   :  { %v17_v0 = vld [vmem:[%s112_s1] sm:$0x3f]  ;;  %51 = vset.pattern.permute.xlu0 %v74_v1 }
   0x2   :  { %8 = vsyncpa [#allocation3], 0  ;;  %20 = vperm.xlu0 %51, %v17_v0   ;;  %v25_v2 = vld [vmem:[%s113_s2] sm:$0x3f]  ;;  %v16_v5 = vld [vmem:[%s111_s0 + $0x8] sm:$0x3f] }
   0x3   :  { %v15_v4 = vld [vmem:[%s111_s0] sm:$0x3f]  ;;  %s75_s20 = smov [#allocation2]  }
   0x4   :  { %s41_s1 = sshll.u32 %s75_s20, 4  ;;  %s42_s1 = int_to_ptr.vmem [resolvable:$true] %s41_s1 }
   0x5   :  { %s52_s2 = scalar_lea.vmem %s42_s1, 256  ;;  %p57_p1 = scmp.lt.s32.totalorder %s42_s1, %s42_s1 }
   0x6   :  { %28 = vperm.xlu0 %51, %v25_v2   ;;  %p53_p0 = scmp.ne.s32.totalorder %s42_s1, %s52_s2  ;;  %p58_p2 = scmp.lt.s32.totalorder %s52_s2, %s52_s2 }
   0x8   :  { %p59_p3 = por %p58_p2, %p57_p1 }
   0xa   :  { %p60_p4 = pnand %p59_p3, %p53_p0 }
  0x7d   :  { %v21_v3 = vpop.permute.xlu0 %20 }
  0x7e   :  { %v23_v6 = vmul.f32 %v21_v3, %v15_v4  ;;  %v24_v7 = vmul.f32 %v21_v3, %v16_v5 }
  0x81   :  { %v29_v8 = vpop.permute.xlu0 %28 }
  0x82   :  { %v31_v9 = vadd.f32 %v29_v8, %v23_v6  ;;  %v32_v10 = vadd.f32 %v29_v8, %v24_v7 }
  0x84   :  { %33 = vst [vmem:[#allocation2] sm:$0x3f] %v31_v9  ;;  %34 = vst [vmem:[#allocation2 + $0x8] sm:$0x3f] %v32_v10 }
  0x85   :  { %63 = shalt.err (!%p60_p4)
}
  0x86   :  { %44 = dma.vmem_to_hbm [thread:$0]  %s42_s1, 256, %s114_s3, [#allocation3]  }
  0x87   :  { %72 = dma.done.wait [#allocation3], 256  }
  0x88   :  { %73 = vsyncadd [#allocation3], 4294967040 }
  0x89   :  { %48 = vsyncpa [#allocation3], 1 }

</bundles_post_ra>
